<compile_context>
chip_gen: v5e
topology: v5e:2x2
jax: 0.10.0
libtpu: 0.0.40
codegen_flags: <defaults>
</compile_context>

<pallas_src>
import math

import jax
import jax.numpy as jnp
from jax import lax
from jax.experimental import pallas as pl
from jax.experimental.pallas import tpu as pltpu

_LANES = 128
_FREQ_MIN, _FREQ_MAX = 20.0, 2000.0   # ParamaterNormalizer('freq')
_MOD_MIN, _MOD_MAX = -1.0, 2.0        # ParamaterNormalizer('mod')


def _round_up(x: int, m: int) -> int:
    return ((x + m - 1) // m) * m


def _largest_divisor_leq(n: int, cap: int) -> int:
    for d in range(min(n, cap), 0, -1):
        if n % d == 0:
            return d
    return 1


def sinusoidal_oscillator(num_samples, freq, mod_env, mod_amount, *, sample_rate,
                          out_dtype=jnp.float32, chunk_rows=None,
                          chunks_per_tile=None, max_tile_rows=2048):
    """freq, mod_amount: (B,1) in [0,1]; mod_env: (B,num_samples). Returns (B,N)."""
    B = freq.shape[0]
    assert freq.ndim == 2 and freq.shape[1] == 1
    assert mod_amount.shape == freq.shape
    assert mod_env.shape == (B, num_samples)
    N = num_samples

    # --- pad the sample axis so it reshapes to full (8,128) tiles -------------
    mod_env = mod_env.astype(jnp.float32)
    n_pad = _round_up(max(N, 1), 8 * _LANES)
    # Prefer full 128-row chunks when the extra padding is cheap (<= N/16).
    n_pad_big = _round_up(n_pad, 128 * _LANES)
    if n_pad % (128 * _LANES) != 0 and (n_pad_big - N) * 16 <= N:
        n_pad = n_pad_big
    if n_pad != N:
        mod_env = jnp.pad(mod_env, ((0, 0), (0, n_pad - N)))
    rows = n_pad // _LANES                                   # multiple of 8

    # --- tiling: `ch` rows per scan chunk (<=128), `C` chunks per grid tile ----
    ch = math.gcd(rows, _LANES) if chunk_rows is None else int(chunk_rows)
    assert ch % 8 == 0 and ch <= _LANES and rows % ch == 0
    chunks_total = rows // ch
    if chunks_per_tile is None:
        C = _largest_divisor_leq(chunks_total, max(1, max_tile_rows // ch))
    else:
        C = int(chunks_per_tile)
    assert chunks_total % C == 0
    tm = C * ch                                              # rows per grid tile
    rb = chunks_total // C                                   # tiles along samples

    mod_env_r = mod_env.reshape(B, rows, _LANES)

    # --- per-batch parameter denormalization (once, outside the kernel) -------
    freq = freq.astype(jnp.float32)
    mod_amount = mod_amount.astype(jnp.float32)
    f0 = _FREQ_MIN + (_FREQ_MAX - _FREQ_MIN) * freq
    f0_rad = (2.0 * math.pi / float(sample_rate)) * f0       # (B,1) rad/sample
    amt = _MOD_MIN + (_MOD_MAX - _MOD_MIN) * mod_amount
    mod_scale = f0_rad * amt                                  # (B,1)

    # --- small resident constants (size independent of the tile size) ---------
    k = jnp.arange(_LANES)
    tl = (k[:, None] < k[None, :]).astype(jnp.float32)        # (128,128): lanes < j
    i = jnp.arange(ch)
    tr = (i[None, :] < i[:, None]).astype(jnp.float32)        # (ch,ch): rows < i
    ramp = (i[:, None] * _LANES + k[None, :]).astype(jnp.float32)  # (ch,128)

    hi = lax.Precision.HIGHEST

    def kernel(f0_ref, ms_ref, env_ref, tl_ref, tr_ref, ramp_ref, o_ref, carry_ref):
        b = pl.program_id(0)
        r = pl.program_id(1)

        @pl.when(r == 0)
        def _():
            carry_ref[...] = jnp.zeros_like(carry_ref)

        f0r = f0_ref[pl.ds(b, 1), :]                          # (1,1)
        ms = ms_ref[pl.ds(b, 1), :]                           # (1,1)
        tl_m = tl_ref[...]
        tr_m = tr_ref[...]
        ramp_v = ramp_ref[...]

        run = carry_ref[...]                                  # (1,1) running env sum
        tile_base = r * (tm * _LANES)                         # first sample of tile

        # Static unrolled chunk loop; only a (1,1) scalar carries between chunks.
        for c in range(C):
            mc = env_ref[0, c * ch:(c + 1) * ch, :]           # (ch,128) chunk
            # Exclusive prefix along lanes (MXU, f32-precision passes).
            e_lane = jnp.dot(mc, tl_m, precision=hi,
                             preferred_element_type=jnp.float32)
            rs = jnp.sum(mc, axis=-1, keepdims=True)          # (ch,1) row totals
            # Exclusive prefix of the ch row totals (tiny mat-vec on the MXU).
            p_row = jnp.dot(tr_m, rs, precision=hi,
                            preferred_element_type=jnp.float32)

            base = (tile_base + c * (ch * _LANES)).astype(jnp.float32)
            c0 = f0r * base + ms * run                        # (1,1) per-chunk offset
            phase = ramp_v * f0r + (e_lane + p_row) * ms + c0
            o_ref[0, c * ch:(c + 1) * ch, :] = jnp.sin(phase).astype(o_ref.dtype)

            run = run + jnp.sum(rs, axis=0, keepdims=True)    # chunk total

        carry_ref[...] = run

    out = pl.pallas_call(
        kernel,
        out_shape=jax.ShapeDtypeStruct((B, rows, _LANES), out_dtype),
        grid_spec=pltpu.PrefetchScalarGridSpec(
            num_scalar_prefetch=0,
            grid=(B, rb),
            in_specs=[
                pl.BlockSpec((B, 1), lambda b, r: (0, 0)),               # f0_rad
                pl.BlockSpec((B, 1), lambda b, r: (0, 0)),               # mod_scale
                pl.BlockSpec((1, tm, _LANES), lambda b, r: (b, r, 0)),   # mod_env tile
                pl.BlockSpec((_LANES, _LANES), lambda b, r: (0, 0)),     # lane-scan mat
                pl.BlockSpec((ch, ch), lambda b, r: (0, 0)),             # row-scan mat
                pl.BlockSpec((ch, _LANES), lambda b, r: (0, 0)),         # in-chunk ramp
            ],
            out_specs=pl.BlockSpec((1, tm, _LANES), lambda b, r: (b, r, 0)),
            scratch_shapes=[pltpu.VMEM((1, 1), jnp.float32)],            # phase carry
        ),
        compiler_params=pltpu.CompilerParams(
            dimension_semantics=("parallel", "arbitrary"),
        ),
    )(f0_rad, mod_scale, mod_env_r, tl, tr, ramp)

    return out.reshape(B, n_pad)[:, :N]


def _reference(num_samples, freq, mod_env, mod_amount, sample_rate):
    """Plain-JAX mirror of the PyTorch forward."""
    B = freq.shape[0]
    f0 = _FREQ_MIN + (_FREQ_MAX - _FREQ_MIN) * freq
    f0 = 2.0 * jnp.pi * f0 / sample_rate
    amt = _MOD_MIN + (_MOD_MAX - _MOD_MIN) * mod_amount
    freq_env = jnp.ones((B, num_samples), jnp.float32) * f0 + mod_env * amt * f0
    freq_env = jnp.concatenate([jnp.zeros((B, 1), jnp.float32), freq_env], axis=-1)
    phase = jnp.cumsum(freq_env, axis=-1)[:, :-1]
    return jnp.sin(phase)


if __name__ == "__main__":
    key = jax.random.PRNGKey(0)
    kf, ka, ke, ke2 = jax.random.split(key, 4)

    B, N, SR = 2, 2048, 48000
    freq = jax.random.uniform(kf, (B, 1), dtype=jnp.float32)        # normalized 0..1
    mod_amount = jax.random.uniform(ka, (B, 1), dtype=jnp.float32)  # normalized 0..1
    mod_env = jax.random.uniform(ke, (B, N), dtype=jnp.float32)     # envelope

    ref = _reference(N, freq, mod_env, mod_amount, SR)

    # (a) auto tiling; (b) tiny tiles -> exercises the cross-tile phase carry;
    # (c) multi-chunk tile -> exercises the in-tile chunk carry.
    y_auto = jax.block_until_ready(
        sinusoidal_oscillator(N, freq, mod_env, mod_amount, sample_rate=SR))
    y_small = jax.block_until_ready(
        sinusoidal_oscillator(N, freq, mod_env, mod_amount, sample_rate=SR,
                              chunk_rows=8, chunks_per_tile=1))
    y_multi = jax.block_until_ready(
        sinusoidal_oscillator(N, freq, mod_env, mod_amount, sample_rate=SR,
                              chunk_rows=8, chunks_per_tile=2))

    for y in (y_auto, y_small, y_multi):
        assert y.shape == ref.shape and y.dtype == ref.dtype
        err = float(jnp.max(jnp.abs(y - ref)))
        assert jnp.allclose(y, ref, atol=1e-3), f"max abs err {err}"

    # (d) length that is not a multiple of 1024 (zero-padded remainder path).
    N2 = 1000
    mod_env2 = jax.random.uniform(ke2, (B, N2), dtype=jnp.float32)
    ref2 = _reference(N2, freq, mod_env2, mod_amount, SR)
    y2 = jax.block_until_ready(
        sinusoidal_oscillator(N2, freq, mod_env2, mod_amount, sample_rate=SR))
    assert y2.shape == ref2.shape
    err2 = float(jnp.max(jnp.abs(y2 - ref2)))
    assert jnp.allclose(y2, ref2, atol=1e-3), f"max abs err {err2}"

    print("KERNEL_OK")
</pallas_src>

<mosaic_0001>
module attributes {stable_mosaic.version = 11 : i64} {
  func.func @kernel(%arg0: i32, %arg1: i32, %arg2: memref<2x1xf32, #tpu.memory_space<vmem>>, %arg3: memref<2x1xf32, #tpu.memory_space<vmem>>, %arg4: memref<1x16x128xf32, #tpu.memory_space<vmem>>, %arg5: memref<128x128xf32, #tpu.memory_space<vmem>>, %arg6: memref<16x16xf32, #tpu.memory_space<vmem>>, %arg7: memref<16x128xf32, #tpu.memory_space<vmem>>, %arg8: memref<1x16x128xf32, #tpu.memory_space<vmem>>, %arg9: memref<1x1xf32, #tpu.memory_space<vmem>>) attributes {dimension_semantics = [#tpu.dimension_semantics<parallel>, #tpu.dimension_semantics<arbitrary>], iteration_bounds = array<i64: 2, 1>, scalar_prefetch = 0 : i64, scratch_operands = 1 : i64, tpu.core_type = #tpu.core_type<tc>, window_params = [{pipeline_mode = #tpu.pipeline_mode<synchronous>, transform_indices = @transform_0, window_bounds = array<i64: 2, 1>}, {pipeline_mode = #tpu.pipeline_mode<synchronous>, transform_indices = @transform_1, window_bounds = array<i64: 2, 1>}, {transform_indices = @transform_2, window_bounds = array<i64: 1, 16, 128>}, {pipeline_mode = #tpu.pipeline_mode<synchronous>, transform_indices = @transform_3, window_bounds = array<i64: 128, 128>}, {pipeline_mode = #tpu.pipeline_mode<synchronous>, transform_indices = @transform_4, window_bounds = array<i64: 16, 16>}, {pipeline_mode = #tpu.pipeline_mode<synchronous>, transform_indices = @transform_5, window_bounds = array<i64: 16, 128>}, {transform_indices = @transform_6, window_bounds = array<i64: 1, 16, 128>}]} {
    %c0_i32 = arith.constant 0 : i32
    %0 = arith.cmpi eq, %arg1, %c0_i32 : i32
    %1 = arith.extui %0 : i1 to i32
    %c0_i32_0 = arith.constant 0 : i32
    %2 = arith.cmpi ne, %1, %c0_i32_0 : i32
    scf.if %2 {
      %cst_22 = arith.constant 0.000000e+00 : f32
      %41 = vector.broadcast %cst_22 : f32 to vector<1x1xf32>
      %c0_23 = arith.constant 0 : index
      %c0_24 = arith.constant 0 : index
      %42 = vector.load %arg9[%c0_23, %c0_24] : memref<1x1xf32, #tpu.memory_space<vmem>>, vector<1x1xf32>
      tpu.vector_store %arg9[%c0_23, %c0_24], %41 {strides = array<i32>} : memref<1x1xf32, #tpu.memory_space<vmem>>, vector<1x1xf32>,
    } else {
    }
    %3 = arith.index_cast %arg0 : i32 to index
    %c0 = arith.constant 0 : index
    %4 = vector.load %arg2[%3, %c0] : memref<2x1xf32, #tpu.memory_space<vmem>>, vector<1x1xf32>
    %5 = arith.index_cast %arg0 : i32 to index
    %c0_1 = arith.constant 0 : index
    %6 = vector.load %arg3[%5, %c0_1] : memref<2x1xf32, #tpu.memory_space<vmem>>, vector<1x1xf32>
    %c0_2 = arith.constant 0 : index
    %c0_3 = arith.constant 0 : index
    %7 = vector.load %arg5[%c0_2, %c0_3] : memref<128x128xf32, #tpu.memory_space<vmem>>, vector<128x128xf32>
    %c0_4 = arith.constant 0 : index
    %c0_5 = arith.constant 0 : index
    %8 = vector.load %arg6[%c0_4, %c0_5] : memref<16x16xf32, #tpu.memory_space<vmem>>, vector<16x16xf32>
    %c0_6 = arith.constant 0 : index
    %c0_7 = arith.constant 0 : index
    %9 = vector.load %arg7[%c0_6, %c0_7] : memref<16x128xf32, #tpu.memory_space<vmem>>, vector<16x128xf32>
    %c0_8 = arith.constant 0 : index
    %c0_9 = arith.constant 0 : index
    %10 = vector.load %arg9[%c0_8, %c0_9] : memref<1x1xf32, #tpu.memory_space<vmem>>, vector<1x1xf32>
    %c2048_i32 = arith.constant 2048 : i32
    %11 = arith.muli %arg1, %c2048_i32 : i32
    %c0_10 = arith.constant 0 : index
    %c0_11 = arith.constant 0 : index
    %c0_12 = arith.constant 0 : index
    %12 = vector.load %arg4[%c0_10, %c0_11, %c0_12] : memref<1x16x128xf32, #tpu.memory_space<vmem>>, vector<1x16x128xf32>
    %13 = vector.shape_cast %12 : vector<1x16x128xf32> to vector<16x128xf32>
    %cst = arith.constant dense<0.000000e+00> : vector<16x128xf32>
    %14 = tpu.matmul %13, %7, %cst {dimension_numbers = #tpu.dot_dimension_numbers<[1], [0], [0], [1], [0, 0, 1, 1], [], []>, precision = #tpu.contract_precision<fp32>} : vector<16x128xf32>, vector<128x128xf32>, vector<16x128xf32> -> vector<16x128xf32>
    %cst_13 = arith.constant dense<0.000000e+00> : vector<16xf32>
    %15 = vector.multi_reduction <add>, %13, %cst_13 [1] : vector<16x128xf32> to vector<16xf32>
    %16 = vector.shape_cast %15 : vector<16xf32> to vector<16x1xf32>
    %cst_14 = arith.constant dense<0.000000e+00> : vector<16x1xf32>
    %17 = tpu.matmul %8, %16, %cst_14 {dimension_numbers = #tpu.dot_dimension_numbers<[1], [0], [0], [1], [0, 0, 1, 1], [], []>, precision = #tpu.contract_precision<fp32>} : vector<16x16xf32>, vector<16x1xf32>, vector<16x1xf32> -> vector<16x1xf32>
    %c0_i32_15 = arith.constant 0 : i32
    %18 = arith.addi %11, %c0_i32_15 : i32
    %19 = arith.sitofp %18 : i32 to f32
    %20 = vector.broadcast %19 : f32 to vector<1x1xf32>
    %21 = arith.mulf %4, %20 : vector<1x1xf32>
    %22 = arith.mulf %6, %10 : vector<1x1xf32>
    %23 = arith.addf %21, %22 : vector<1x1xf32>
    %24 = vector.broadcast %4 : vector<1x1xf32> to vector<16x128xf32>
    %25 = arith.mulf %9, %24 : vector<16x128xf32>
    %26 = vector.broadcast %17 : vector<16x1xf32> to vector<16x128xf32>
    %27 = arith.addf %14, %26 : vector<16x128xf32>
    %28 = vector.broadcast %6 : vector<1x1xf32> to vector<16x128xf32>
    %29 = arith.mulf %27, %28 : vector<16x128xf32>
    %30 = arith.addf %25, %29 : vector<16x128xf32>
    %31 = vector.broadcast %23 : vector<1x1xf32> to vector<16x128xf32>
    %32 = arith.addf %30, %31 : vector<16x128xf32>
    %33 = math.sin %32 : vector<16x128xf32>
    %c0_16 = arith.constant 0 : index
    %c0_17 = arith.constant 0 : index
    %c0_18 = arith.constant 0 : index
    %34 = vector.load %arg8[%c0_16, %c0_17, %c0_18] : memref<1x16x128xf32, #tpu.memory_space<vmem>>, vector<1x16x128xf32>
    %35 = vector.shape_cast %34 : vector<1x16x128xf32> to vector<16x128xf32>
    %36 = vector.shape_cast %33 : vector<16x128xf32> to vector<1x16x128xf32>
    tpu.vector_store %arg8[%c0_16, %c0_17, %c0_18], %36 {strides = array<i32>} : memref<1x16x128xf32, #tpu.memory_space<vmem>>, vector<1x16x128xf32>,
    %cst_19 = arith.constant dense<0.000000e+00> : vector<1xf32>
    %37 = vector.multi_reduction <add>, %16, %cst_19 [0] : vector<16x1xf32> to vector<1xf32>
    %38 = vector.shape_cast %37 : vector<1xf32> to vector<1x1xf32>
    %39 = arith.addf %10, %38 : vector<1x1xf32>
    %c0_20 = arith.constant 0 : index
    %c0_21 = arith.constant 0 : index
    %40 = vector.load %arg9[%c0_20, %c0_21] : memref<1x1xf32, #tpu.memory_space<vmem>>, vector<1x1xf32>
    tpu.vector_store %arg9[%c0_20, %c0_21], %39 {strides = array<i32>} : memref<1x1xf32, #tpu.memory_space<vmem>>, vector<1x1xf32>,
    return
  }
  func.func @transform_0(%arg0: i32, %arg1: i32) -> (i32, i32) {
    %c0_i32 = arith.constant 0 : i32
    %c0_i32_0 = arith.constant 0 : i32
    %c0_i32_1 = arith.constant 0 : i32
    return %c0_i32, %c0_i32_0 : i32, i32
  }
  func.func @transform_1(%arg0: i32, %arg1: i32) -> (i32, i32) {
    %c0_i32 = arith.constant 0 : i32
    %c0_i32_0 = arith.constant 0 : i32
    %c0_i32_1 = arith.constant 0 : i32
    return %c0_i32, %c0_i32_0 : i32, i32
  }
  func.func @transform_2(%arg0: i32, %arg1: i32) -> (i32, i32, i32) {
    %c0_i32 = arith.constant 0 : i32
    %c0_i32_0 = arith.constant 0 : i32
    return %arg0, %arg1, %c0_i32 : i32, i32, i32
  }
  func.func @transform_3(%arg0: i32, %arg1: i32) -> (i32, i32) {
    %c0_i32 = arith.constant 0 : i32
    %c0_i32_0 = arith.constant 0 : i32
    %c0_i32_1 = arith.constant 0 : i32
    return %c0_i32, %c0_i32_0 : i32, i32
  }
  func.func @transform_4(%arg0: i32, %arg1: i32) -> (i32, i32) {
    %c0_i32 = arith.constant 0 : i32
    %c0_i32_0 = arith.constant 0 : i32
    %c0_i32_1 = arith.constant 0 : i32
    return %c0_i32, %c0_i32_0 : i32, i32
  }
  func.func @transform_5(%arg0: i32, %arg1: i32) -> (i32, i32) {
    %c0_i32 = arith.constant 0 : i32
    %c0_i32_0 = arith.constant 0 : i32
    %c0_i32_1 = arith.constant 0 : i32
    return %c0_i32, %c0_i32_0 : i32, i32
  }
  func.func @transform_6(%arg0: i32, %arg1: i32) -> (i32, i32, i32) {
    %c0_i32 = arith.constant 0 : i32
    %c0_i32_0 = arith.constant 0 : i32
    return %arg0, %arg1, %c0_i32 : i32, i32, i32
  }
}

</mosaic_0001>

<bundles_post_ra>
// kernel: tpu_custom_call.1
= control target key start
LH: loop header
LB: loop body
LE: loop exit
PB: predicated region body
PF: predicated region fallthrough
CT: control target
= control target key end

     0   :  { %s2476_s0 = inlined_call_operand.vmem [shape: f32[2,1], index: 0, kind: input, shape index: {}]   ;;  %s2477_s1 = inlined_call_operand.vmem [shape: f32[2,1], index: 1, kind: input, shape index: {}]   ;;  %s2478_s2 = inlined_call_operand.hbm [shape: f32[2,16,128], index: 2, kind: input, shape index: {}]   ;;  %s2479_s3 = inlined_call_operand.hbm [shape: f32[128,128], index: 3, kind: input, shape index: {}]   ;;  %s2480_s4 = inlined_call_operand.hbm [shape: f32[16,16], index: 4, kind: input, shape index: {}]   ;;  %s2481_s5 = inlined_call_operand.hbm [shape: f32[16,128], index: 5, kind: input, shape index: {}]   ;;  %s2482_s6 = inlined_call_operand.hbm [shape: f32[2,16,128], index: 6, kind: output, shape index: {}]  }
   0x1   :  { %2486 = sst [smem:[#allocation17_spill]] %s2479_s3 }
   0x2   :  { %2487 = sst [smem:[#allocation18_spill]] %s2480_s4 }
   0x3   :  { %2488 = sst [smem:[#allocation19_spill]] %s2481_s5 }
   0x4   :  { %11 = vsyncpa [#allocation4], 0 }
   0x5   :  { %13 = vsyncpa [#allocation4 + $0x1], 0 }
   0x6   :  { %14 = vsyncpa [#allocation7], 0 }
   0x7   :  { %15 = vsyncpa [#allocation10], 0 }
   0x8   :  { %16 = vsyncpa [#allocation5], 0 }
   0x9   :  { %18 = vsyncpa [#allocation5 + $0x1], 0  ;;  %s1846_s21 = smov 0   ;;  %s1848_s22 = smov 0  }
   0xa   :  { %s1850_s23 = smov 0   ;;  %s1852_s24 = smov 0  }
   0xb   :  { %s1854_s25 = smov 0   ;;  %s1856_s26 = smov 0  }
   0xc LB: > { %s1442_s27 = sadd.s32 4294967295, %s1794_s26   ;;  %s1443_s28 = sadd.s32 4294967294, %s1794_s26   ;;  %s1794_s26 = sphi %s1856_s26, %s24_s26   ;;  %s1790_s25 = sphi %s1854_s25, %s2510_s25   ;;  %s1786_s24 = sphi %s1852_s24, %s2509_s24   ;;  %s1782_s23 = sphi %s1850_s23, %s2508_s23   ;;  %s1778_s22 = sphi %s1848_s22, %s2507_s22   ;;  %s1774_s21 = sphi %s1846_s21, %s2506_s21  }
   0xd   : > { %p100_p0 = scmp.ne.s32.totalorder %s1778_s22, %s1774_s21  ;;  %p1880_p1 = scmp.eq.s32.totalorder %s1442_s27, 0 }
   0xe   : > { %p1884_p2 = scmp.eq.s32.totalorder %s1442_s27, 1  ;;  %p195_p3 = scmp.eq.s32.totalorder %s1443_s28, 1 }
   0xf   : > { %p1890_p4 = por %p1880_p1, %p100_p0  ;;  %p1444_p5 = scmp.ge.s32.totalorder %s1794_s26, 1 }
  0x10   : > { %p1895_p6 = por %p195_p3, %p100_p0  ;;  %p202_p7 = scmp.lt.s32.totalorder %s1794_s26, 3 }
  0x11   : > { %s2493_s3 = sld [smem:[#allocation17_spill]]  ;;  %s1796_s13 = smov [#allocation6]  }
  0x12   : > { %p1903_p8 = pnand %p1444_p5, %p202_p7  ;;  %s221_s14 = sshll.u32 %s1796_s13, 4  ;;  %s222_s14 = int_to_ptr.vmem [resolvable:$true] %s221_s14 }
  0x13   : > { %p1448_p11 = scmp.ge.s32.totalorder %s1794_s26, 2  ;;  %s2496_s4 = sld [smem:[#allocation18_spill]] }
  0x14   : > { %p1493_p9 = pneg %p1903_p8  ;;  %s2483_s19 = smov 128  }
  0x15   : > { %s2484_s20 = smov 8   ;;  %s1799_s27 = smov [#allocation8]  }
  0x16   : > { %p1911_p10 = pnand %p1493_p9, %p1880_p1  ;;  %s235_s28 = sshll.u32 %s1799_s27, 4  ;;  %s236_s28 = int_to_ptr.vmem [resolvable:$true] %s235_s28 }
  0x17   : > { %s219_s11 = sshll.u32 %s2493_s3, 4  ;;  %s2497_s5 = sld [smem:[#allocation19_spill]]  ;;  %s220_s11 = int_to_ptr.hbm [resolvable:$true] %s219_s11 }
  0x18   : > { %1496 = dma.hbm_to_vmem [thread:$0]  (!%p1911_p10), %s220_s11, 2048, %s222_s14, [#allocation7], %s2483_s19, %s2483_s19, %s2484_s20  }
  0x19   : > { %s233_s18 = sshll.u32 %s2496_s4, 4  ;;  %s1800_s16 = smov [#allocation9]   ;;  %s234_s18 = int_to_ptr.hbm [resolvable:$true] %s233_s18 }
  0x1a   : > { %1499 = dma.hbm_to_vmem [thread:$0]  (!%p1911_p10), %s234_s18, 256, %s236_s28, [#allocation7], %s2483_s19, %s2483_s19, %s2484_s20  }
  0x1b   : > { %s249_s17 = sshll.u32 %s1800_s16, 4  ;;  %s36_s11 = sadd.s32 1, %s1790_s25  ;;  %s250_s17 = int_to_ptr.vmem [resolvable:$true] %s249_s17 }
  0x1c   : > { %p38_p12 = scmp.ge.s32.totalorder %s36_s11, 2  ;;  %s87_s14 = sadd.s32 1, %s1782_s23 }
  0x1d   : > { %s247_s13 = sshll.u32 %s2497_s5, 4  ;;  %p94_p13 = scmp.ne.s32.totalorder %s1782_s23, %s1778_s22  ;;  %s248_s13 = int_to_ptr.hbm [resolvable:$true] %s247_s13 }
  0x1e   : > { %1502 = dma.hbm_to_vmem [thread:$0]  (!%p1911_p10), %s248_s13, 256, %s250_s17, [#allocation10], %s2483_s19, %s2483_s19, %s2484_s20  }
  0x1f   : > { %p95_p0 = scmp.eq.s32.totalorder %s1794_s26, 0  ;;  %s2512_s11 = smov (%p38_p12, %s36_s11), 0 }
  0x20   : > { %2498 = sst [smem:[#allocation16_spill]] %s2512_s11  ;;  %p1950_p5 = por %p1884_p2, %p94_p13 }
  0x21   : > { %p1944_p3 = por %p95_p0, %p94_p13  ;;  %s82_s27 = ssub.s32 %s1790_s25, %s2512_s11 }
  0x22   : > { %p1514_p7 = scmp.lt.s32.totalorder %s1794_s26, 2  ;;  %p85_p9 = scmp.eq.s32.totalorder %s82_s27, 0 }
  0x23   : > { %s263_s28 = sand.u32 1, %s1782_s23   ;;  %s1469_s13 = sshll.u32 %s1790_s25, 4 }
  0x24   : > { %s1449_s9 = sshll.u32 %s263_s28, 4  ;;  %s274_s19 = scalar_lea.hbm %s2478_s2, %s1469_s13 }
  0x25   : > { %s1959_s10 = scalar_select %p85_p9, %s1782_s23, %s87_s14  }
  0x26   : > { %s267_s20 = scalar_lea.vmem [#allocation3], %s1449_s9  ;;  %s275_s30 = sshll.u32 %s274_s19, 4  ;;  %s276_s30 = int_to_ptr.hbm [resolvable:$true] %s275_s30 }
  0x27   : > { %s277_s3 = sshll.u32 %s267_s20, 4  ;;  %p1504_p2 = pnand %p1514_p7, %p1944_p3  ;;  %s278_s3 = int_to_ptr.vmem [resolvable:$true] %s277_s3 }
  0x28   : > { %s264_s4 = scalar_lea.sflag [#allocation4], %s263_s28  ;;  %s2501_s5 = smov 8  }
  0x29   : > { %s2502_s11 = smov 128   ;;  %289 = sbr.rel (%p1903_p8) target bundleno = 583 (0x247), region = 44 }
  0x2a   : > { %1506 = dma.hbm_to_vmem [thread:$0]  (!%p1504_p2), %s276_s30, 256, %s278_s3, %s264_s4, %s2502_s11, %s2502_s11, %s2501_s5  }
  0x2b   : > { %s1973_s14 = sand.u32 (!%p1903_p8), 1, %s1778_s22  }
  0x2c   : > { %s1453_s19 = sshll.u32 (!%p1903_p8), %s1973_s14, 4  ;;  %s292_s20 = scalar_lea.sflag (!%p1903_p8), [#allocation4], %s1973_s14 }
  0x2d   : > { %s295_s18 = scalar_lea.vmem (!%p1903_p8), [#allocation3], %s1453_s19 }
  0x2e   : > { %1757 = dma.done.wait (%p1890_p4), %s292_s20, 256  }
  0x2f   : > { %1759 = vsyncadd (%p1890_p4), %s292_s20, 4294967040 }
  0x30   : > { %1761 = dma.done.wait (%p1880_p1), [#allocation7], 2304  }
  0x31   : > { %1763 = vsyncadd (%p1880_p1), [#allocation7], 4294964992 }
  0x32   : > { %1765 = dma.done.wait (%p1880_p1), [#allocation10], 256  }
  0x33   : > { %1767 = vsyncadd (%p1880_p1), [#allocation10], 4294967040  ;;  %v1991_v0 = vld [vmem:[%s295_s18 + $0x8] sm:$0xff]  ;;  %v1994_v1 = vld [vmem:[%s295_s18] sm:$0xff]  ;;  %vm346_vm0 = vcmask 0   ;;  %v1801_v2 = vmov 0.0   ;;  %s348_s5 = scalar_lea.vmem %s2476_s0, %s1786_s24  ;;  %s350_s12 = scalar_lea.vmem %s2477_s1, %s1786_s24 }
  0x34   : > { %378 = vadd.xlane.f32.xlu0 %v1991_v0  ;;  %347 = vst.msk [vmem:[#allocation2] sm:$0x1] %vm346_vm0, %v1801_v2  ;;  %v368_v3 = vld [vmem:[#allocation8] sm:$0xff]  ;;  %vm380_vm1 = vcmask 130048   ;;  %v369_v6 = vld [vmem:[#allocation8 + $0x8] sm:$0xff]  ;;  %v367_v27 = vld [vmem:[#allocation6 + $0x78] sm:$0xff] }
  0x35   : > { %v382_v4 = vsel %vm380_vm1, %v368_v3, 0  ;;  %v385_v8 = vsel %vm380_vm1, %v369_v6, 0  ;;  %v366_v28 = vld [vmem:[#allocation6 + $0x70] sm:$0xff]  ;;  %v365_v29 = vld [vmem:[#allocation6 + $0x68] sm:$0xff]  ;;  %v2020_v32 = vand.u32 4294901760, %v367_v27  ;;  %v364_v34 = vld [vmem:[#allocation6 + $0x60] sm:$0xff] }
  0x36   : > { %v1998_v5 = vand.u32 4294901760, %v382_v4  ;;  %v2001_v9 = vand.u32 4294901760, %v385_v8  ;;  %v2022_v33 = vand.u32 4294901760, %v366_v28  ;;  %v363_v35 = vld [vmem:[#allocation6 + $0x58] sm:$0xff]  ;;  %v362_v36 = vld [vmem:[#allocation6 + $0x50] sm:$0xff]  ;;  %v2024_v37 = vand.u32 4294901760, %v365_v29 }
  0x37   : > { %v2026_v38 = vand.u32 4294901760, %v364_v34  ;;  %v2028_v39 = vand.u32 4294901760, %v363_v35  ;;  %v2030_v40 = vand.u32 4294901760, %v362_v36  ;;  %v361_v41 = vld [vmem:[#allocation6 + $0x48] sm:$0xff]  ;;  %v2034_v44 = vsub.f32 %v367_v27, %v2020_v32  ;;  %v360_v50 = vld [vmem:[#allocation6 + $0x40] sm:$0xff]  ;;  %v359_v3 = vld [vmem:[#allocation6 + $0x38] sm:$0xff] }
  0x38   : > { %v406_v7 = vsub.f32 %v382_v4, %v1998_v5  ;;  %v2009_v14 = vsub.f32 %v385_v8, %v2001_v9  ;;  %v2037_v45 = vsub.f32 %v366_v28, %v2022_v33  ;;  %v2040_v47 = vsub.f32 %v365_v29, %v2024_v37  ;;  %v358_v4 = vld [vmem:[#allocation6 + $0x30] sm:$0xff]  ;;  %s2426_s9 = scalar_lea.vmem [#allocation11], %s1453_s19  ;;  %s1470_s13 = sshll.u32 %s1786_s24, 4 }
  0x39   : > { %v2043_v48 = vsub.f32 %v364_v34, %v2026_v38  ;;  %v2046_v49 = vsub.f32 %v363_v35, %v2028_v39  ;;  %v649_v52 = vand.u32 4294901760, %v2034_v44  ;;  %v2051_v54 = vand.u32 4294901760, %v361_v41  ;;  %v354_v29 = vld [vmem:[#allocation6 + $0x10] sm:$0xff]  ;;  %s1320_s30 = scalar_lea.hbm %s2482_s6, %s1470_s13  ;;  %s1321_s19 = sshll.u32 %s2426_s9, 4  ;;  %s1322_s19 = int_to_ptr.vmem [resolvable:$true] %s1321_s19 }
  0x3a   : > { %v407_v11 = vand.u32 4294901760, %v406_v7  ;;  %v415_v18 = vand.u32 4294901760, %v2009_v14  ;;  %v655_v53 = vand.u32 4294901760, %v2037_v45  ;;  %v661_v55 = vand.u32 4294901760, %v2040_v47  ;;  %s1323_s20 = sshll.u32 %s1320_s30, 4  ;;  %s1307_s24 = scalar_lea.sflag [#allocation5], %s1973_s14  ;;  %s1324_s20 = int_to_ptr.hbm [resolvable:$true] %s1323_s20 }
  0x3b   : > { %v667_v56 = vand.u32 4294901760, %v2043_v48  ;;  %v673_v57 = vand.u32 4294901760, %v2046_v49  ;;  %v2058_v58 = vsub.f32 %v362_v36, %v2030_v40  ;;  %v650_v59 = vsub.f32 %v2034_v44, %v649_v52  ;;  %s1718_s18 = sshra.s32 %s1324_s20, 4  ;;  %s1724_s29 = scalar_lea.hbm %s2482_s6, 32  ;;  %s1719_s18 = int_to_ptr.hbm [resolvable:$true] %s1718_s18 }
  0x3c   : > { %376 = vadd.xlane.f32.xlu0 %v1994_v1  ;;  %v408_v15 = vsub.f32 %v406_v7, %v407_v11  ;;  %v416_v26 = vsub.f32 %v2009_v14, %v415_v18  ;;  %v656_v60 = vsub.f32 %v2037_v45, %v655_v53  ;;  %v2067_v61 = vand.u32 4294901760, %v360_v50  ;;  %s1720_s3 = scalar_lea.hbm %s1719_s18, 16  ;;  %p1725_p10 = scmp.lt.s32.totalorder %s1719_s18, %s2482_s6 }
  0x3d   : > { %v662_v63 = vsub.f32 %v2040_v47, %v661_v55  ;;  %v668_v2 = vsub.f32 %v2043_v48, %v667_v56  ;;  %v651_v6 = vand.u32 4294901760, %v650_v59  ;;  %v679_v8 = vand.u32 4294901760, %v2058_v58  ;;  %p1721_p1 = scmp.ne.s32.totalorder %s1719_s18, %s1720_s3  ;;  %p1726_p12 = scmp.lt.s32.totalorder %s1724_s29, %s1720_s3 }
  0x3e   : > { %v409_v20 = vand.u32 4294901760, %v408_v15  ;;  %v417_v43 = vand.u32 4294901760, %v416_v26 }
  0x3f   : > { %v663_v15 = vand.u32 4294901760, %v662_v63  ;;  %v2143_v63 = vld [vmem:[#allocation2] sm:$0x1]  ;;  %p1722_p4 = pnand %p1721_p1, %p1950_p5  ;;  %p1727_p13 = por %p1726_p12, %p1725_p10 }
  0x41   : > { %p1723_p8 = pneg %p1722_p4 }
  0x43   : > { %p1728_p0 = pnand %p1727_p13, %p1723_p8 }
  0xa7   : > { %v379_v10 = vpop.xlane.xlu0 %378 }
  0xa8   : > { %v2003_v12 = vand.u32 4294901760, %v379_v10 }
  0xaa   : > { %v437_v13 = vsub.f32 %v379_v10, %v2003_v12  ;;  %402 = vmatpush.msra.mxu0 %v2003_v12  ;;  %503 = vmatpush.msra.mxu3 %v2003_v12 }
  0xac   : > { %473 = vmatpush.msra.mxu2 %v437_v13  ;;  %v438_v16 = vand.u32 4294901760, %v437_v13 }
  0xae   : > { %v439_v17 = vsub.f32 %v437_v13, %v438_v16  ;;  %v356_v13 = vld [vmem:[#allocation6 + $0x20] sm:$0xff] }
  0xaf   : > { %v377_v19 = vpop.xlane.xlu0 %376 }
  0xb0   : > { %v2012_v21 = vand.u32 4294901760, %v377_v19  ;;  %v1296_v22 = vadd.f32 %v379_v10, %v377_v19  ;;  %v440_v23 = vand.u32 4294901760, %v439_v17  ;;  %v2080_v10 = vsub.f32 %v361_v41, %v2051_v54 }
  0xb1   : > { %v2090_v17 = vand.u32 4294901760, %v359_v3 }
  0xb2   : > { %v443_v24 = vsub.f32 %v377_v19, %v2012_v21  ;;  %v1297_v25 = vrot.slane %v1296_v22, 4  ;;  %404 = vmatpush.msra.mxu0 %v2012_v21  ;;  %441 = vmatpush.msra.mxu1 %v440_v23  ;;  %v2093_v19 = vsub.f32 %v360_v50, %v2067_v61 }
  0xb3   : > { %505 = vmatpush.msra.mxu3 %v2012_v21  ;;  %410 = vmatmul.f32.vlgmr.msra.gmra.mxu0 %v409_v20  ;;  %v2095_v20 = vand.u32 4294901760, %v358_v4  ;;  %v2108_v26 = vsub.f32 %v359_v3, %v2090_v17 }
  0xb4   : > { %v1298_v30 = vadd.f32 %v1297_v25, %v1296_v22  ;;  %536 = vmatpush.msrb.mxu0 %v438_v16  ;;  %476 = vmatpush.msra.mxu2 %v443_v24  ;;  %v444_v31 = vand.u32 4294901760, %v443_v24  ;;  %v685_v16 = vand.u32 4294901760, %v2080_v10  ;;  %v355_v22 = vld [vmem:[#allocation6 + $0x18] sm:$0xff]  ;;  %v691_v25 = vand.u32 4294901760, %v2093_v19 }
  0xb5   : > { %479 = vmatmul.f32.vlgmr.msra.gmra.mxu2 %v406_v7  ;;  %509 = vmatmul.f32.vlgmr.msra.gmra.mxu3 %v407_v11  ;;  %v657_v7 = vand.u32 4294901760, %v656_v60  ;;  %v357_v11 = vld [vmem:[#allocation6 + $0x28] sm:$0xff]  ;;  %v2111_v27 = vsub.f32 %v358_v4, %v2095_v20  ;;  %v2115_v28 = vand.u32 4294901760, %v355_v22  ;;  %v697_v34 = vand.u32 4294901760, %v2108_v26  ;;  %v352_v60 = vld [vmem:[#allocation6] sm:$0xff] }
  0xb6   : > { %540 = vmatpush.msrb.mxu0 %v444_v31  ;;  %v445_v42 = vsub.f32 %v443_v24, %v444_v31  ;;  %599 = vmatpush.msrb.mxu2 %v2020_v32  ;;  %v1299_v46 = vrot.slane %v1298_v30, 2  ;;  %v2098_v23 = vand.u32 4294901760, %v357_v11  ;;  %v2100_v24 = vand.u32 4294901760, %v356_v13 }
  0xb7   : > { %652 = vmatpush.msrb.mxu3 %v651_v6  ;;  %v686_v31 = vsub.f32 %v2080_v10, %v685_v16  ;;  %v692_v36 = vsub.f32 %v2093_v19, %v691_v25  ;;  %v703_v50 = vand.u32 4294901760, %v2111_v27  ;;  %v2139_v59 = vsub.f32 %v355_v22, %v2115_v28 }
  0xb8   : > { %v446_v51 = vand.u32 4294901760, %v445_v42  ;;  %601 = vmatpush.msrb.mxu2 %v2022_v33  ;;  %754 = vmatpush.msra.mxu0 %v2034_v44  ;;  %v1300_v62 = vadd.f32 %v1299_v46, %v1298_v30  ;;  %v2123_v35 = vsub.f32 %v357_v11, %v2098_v23  ;;  %v2132_v41 = vsub.f32 %v356_v13, %v2100_v24  ;;  %v353_v42 = vld [vmem:[#allocation6 + $0x8] sm:$0xff] }
  0xb9   : > { %658 = vmatpush.msrb.mxu3 %v657_v7  ;;  %v2150_v4 = vand.u32 4294901760, %v353_v42  ;;  %v693_v6 = vand.u32 4294901760, %v692_v36  ;;  %v704_v11 = vsub.f32 %v2111_v27, %v703_v50  ;;  %v630_v44 = vand.u32 4294901760, %v1994_v1 }
  0xba   : > { %447 = vmatpush.msra.mxu1 %v446_v51  ;;  %603 = vmatpush.msrb.mxu2 %v2024_v37  ;;  %v2136_v51 = vand.u32 4294901760, %v354_v29  ;;  %v709_v3 = vand.u32 4294901760, %v2123_v35  ;;  %v715_v7 = vand.u32 4294901760, %v2132_v41 }
  0xbb   : > { %418 = vmatmul.f32.gmra.mxu0 %v417_v43  ;;  %449 = vmatmul.f32.vlgmr.msra.gmra.mxu1 %v1998_v5 }
  0xbc   : > { %565 = vmatpush.msrb.mxu1 %v2003_v12  ;;  %605 = vmatpush.msrb.mxu2 %v2026_v38  ;;  %v674_v12 = vsub.f32 %v2046_v49, %v673_v57  ;;  %v2160_v13 = vsub.f32 %v354_v29, %v2136_v51  ;;  %v705_v29 = vand.u32 4294901760, %v704_v11 }
  0xbd   : > { %484 = vmatmul.f32.gmra.mxu2 %v2009_v14  ;;  %515 = vmatmul.f32.gmra.mxu3 %v415_v18  ;;  %v1301_v14 = vrot.slane %v1300_v62, 1  ;;  %v669_v18 = vand.u32 4294901760, %v668_v2  ;;  %v698_v2 = vsub.f32 %v2108_v26, %v697_v34 }
  0xbe   : > { %567 = vmatpush.msrb.mxu1 %v2012_v21  ;;  %607 = vmatpush.msrb.mxu2 %v2028_v39  ;;  %v680_v21 = vsub.f32 %v2058_v58, %v679_v8  ;;  %v675_v30 = vand.u32 4294901760, %v674_v12 }
  0xbf   : > { %757 = vmatpush.msra.mxu0 %v2037_v45  ;;  %664 = vmatpush.msrb.mxu3 %v663_v15  ;;  %v1302_v43 = vadd.f32 %v1301_v14, %v1300_v62  ;;  %v687_v62 = vand.u32 4294901760, %v686_v31  ;;  %v2162_v15 = vand.u32 4294901760, %v352_v60  ;;  %v699_v22 = vand.u32 4294901760, %v698_v2 }
  0xc0   : > { %812 = vmatpush.msra.mxu1 %v2020_v32  ;;  %609 = vmatpush.msrb.mxu2 %v2030_v40  ;;  %v681_v46 = vand.u32 4294901760, %v680_v21  ;;  %v710_v14 = vsub.f32 %v2123_v35, %v709_v3  ;;  %v2173_v21 = vsub.f32 %v353_v42, %v2150_v4  ;;  %v727_v31 = vand.u32 4294901760, %v2160_v13 }
  0xc1   : > { %760 = vmatpush.msra.mxu0 %v2040_v47  ;;  %670 = vmatpush.msrb.mxu3 %v669_v18  ;;  %v1303_v12 = vadd.f32 %v1302_v43, %v2143_v63  ;;  %v721_v18 = vand.u32 4294901760, %v2139_v59  ;;  %v2184_v36 = vsub.f32 %v352_v60, %v2162_v15  ;;  %v1802_v47 = vmov 0  }
  0xc2   : > { %814 = vmatpush.msra.mxu1 %v2022_v33  ;;  %611 = vmatpush.msrb.mxu2 %v2051_v54  ;;  %v733_v43 = vand.u32 4294901760, %v2173_v21  ;;  %v728_v60 = vsub.f32 %v2160_v13, %v727_v31 }
  0xc3   : > { %453 = vmatmul.f32.gmra.mxu1 %v2001_v9  ;;  %542 = vmatmul.f32.vlgmr.msrb.gmra.mxu0 %v1998_v5  ;;  %1305 = vst.msk [vmem:[#allocation2] sm:$0x1] %vm346_vm0, %v1303_v12  ;;  %v722_v42 = vsub.f32 %v2139_v59, %v721_v18 }
  0xc4   : > { %763 = vmatpush.msra.mxu0 %v2043_v48  ;;  %816 = vmatpush.msra.mxu1 %v2024_v37  ;;  %v729_v11 = vand.u32 4294901760, %v728_v60 }
  0xc5   : > { %676 = vmatpush.msrb.mxu3 %v675_v30  ;;  %613 = vmatpush.msrb.mxu2 %v2067_v61  ;;  %v716_v30 = vsub.f32 %v2132_v41, %v715_v7  ;;  %v723_v2 = vand.u32 4294901760, %v722_v42 }
  0xc6   : > { %766 = vmatpush.msra.mxu0 %v2046_v49  ;;  %818 = vmatpush.msra.mxu1 %v2026_v38  ;;  %v349_v49 = vld [vmem:[%s348_s5] sm:$0x1] }
  0xc7   : > { %682 = vmatpush.msrb.mxu3 %v681_v46  ;;  %615 = vmatpush.msrb.mxu2 %v2090_v17  ;;  %v717_v46 = vand.u32 4294901760, %v716_v30  ;;  %1471 = vpush %v349_v49 }
  0xc8   : > { %769 = vmatpush.msra.mxu0 %v2058_v58  ;;  %820 = vmatpush.msra.mxu1 %v2028_v39 }
  0xc9   : > { %688 = vmatpush.msrb.mxu3 %v687_v62  ;;  %617 = vmatpush.msrb.mxu2 %v2095_v20  ;;  %v739_v62 = vand.u32 4294901760, %v2184_v36 }
  0xca   : > { %772 = vmatpush.msra.mxu0 %v2080_v10  ;;  %822 = vmatpush.msra.mxu1 %v2030_v40 }
  0xcb   : > { %546 = vmatmul.f32.gmra.mxu0 %v2001_v9  ;;  %569 = vmatmul.f32.vlgmr.msrb.gmra.mxu1 %v1998_v5  ;;  %v711_v5 = vand.u32 4294901760, %v710_v14  ;;  %v740_v12 = vsub.f32 %v2184_v36, %v739_v62 }
  0xcc   : > { %694 = vmatpush.msrb.mxu3 %v693_v6  ;;  %619 = vmatpush.msrb.mxu2 %v2098_v23  ;;  %v734_v6 = vsub.f32 %v2173_v21, %v733_v43 }
  0xcd   : > { %775 = vmatpush.msra.mxu0 %v2093_v19  ;;  %824 = vmatpush.msra.mxu1 %v2051_v54 }
  0xce   : > { %700 = vmatpush.msrb.mxu3 %v699_v22  ;;  %621 = vmatpush.msrb.mxu2 %v2100_v24  ;;  %v735_v22 = vand.u32 4294901760, %v734_v6 }
  0xcf   : > { %778 = vmatpush.msra.mxu0 %v2108_v26  ;;  %826 = vmatpush.msra.mxu1 %v2067_v61 }
  0xd0   : > { %706 = vmatpush.msrb.mxu3 %v705_v29  ;;  %623 = vmatpush.msrb.mxu2 %v2115_v28 }
  0xd1   : > { %781 = vmatpush.msra.mxu0 %v2111_v27  ;;  %828 = vmatpush.msra.mxu1 %v2090_v17 }
  0xd2   : > { %712 = vmatpush.msrb.mxu3 %v711_v5  ;;  %625 = vmatpush.msrb.mxu2 %v2136_v51  ;;  %v370_v5 = vld [vmem:[#allocation9] sm:$0xff] }
  0xd3   : > { %573 = vmatmul.f32.gmra.mxu1 %v2001_v9  ;;  %784 = vmatpush.msra.mxu0 %v2123_v35  ;;  %v741_v9 = vand.u32 4294901760, %v740_v12 }
  0xd4   : > { %718 = vmatpush.msrb.mxu3 %v717_v46  ;;  %627 = vmatpush.msrb.mxu2 %v2150_v4 }
  0xd5   : > { %830 = vmatpush.msra.mxu1 %v2095_v20  ;;  %787 = vmatpush.msra.mxu0 %v2132_v41 }
  0xd6   : > { %724 = vmatpush.msrb.mxu3 %v723_v2  ;;  %629 = vmatpush.msrb.mxu2 %v2162_v15 }
  0xd7   : > { %832 = vmatpush.msra.mxu1 %v2098_v23  ;;  %790 = vmatpush.msra.mxu0 %v2139_v59 }
  0xd8   : > { %859 = vmatpush.msra.mxu2 %v649_v52  ;;  %730 = vmatpush.msrb.mxu3 %v729_v11  ;;  %v351_v52 = vld [vmem:[%s350_s12] sm:$0x1] }
  0xd9   : > { %834 = vmatpush.msra.mxu1 %v2100_v24  ;;  %793 = vmatpush.msra.mxu0 %v2160_v13  ;;  %1473 = vpush %v351_v52 }
  0xda   : > { %863 = vmatpush.msra.mxu2 %v655_v53  ;;  %736 = vmatpush.msrb.mxu3 %v735_v22  ;;  %v579_v53 = vmul.f32 0.0, %v349_v49 }
  0xdb   : > { %836 = vmatpush.msra.mxu1 %v2115_v28  ;;  %796 = vmatpush.msra.mxu0 %v2173_v21 }
  0xdc   : > { %867 = vmatpush.msra.mxu2 %v661_v55  ;;  %742 = vmatpush.msrb.mxu3 %v741_v9 }
  0xdd   : > { %744 = vmatmul.f32.vlgmr.msrb.gmra.mxu3 %v630_v44  ;;  %838 = vmatpush.msra.mxu1 %v2136_v51 }
  0xde   : > { %930 = vmatpush.msra.mxu3 %v2020_v32  ;;  %871 = vmatpush.msra.mxu2 %v667_v56  ;;  %v631_v32 = vsub.f32 %v1994_v1, %v630_v44 }
  0xdf   : > { %799 = vmatpush.msra.mxu0 %v2184_v36  ;;  %840 = vmatpush.msra.mxu1 %v2150_v4 }
  0xe0   : > { %932 = vmatpush.msra.mxu3 %v2022_v33  ;;  %875 = vmatpush.msra.mxu2 %v673_v57  ;;  %v638_v33 = vand.u32 4294901760, %v1991_v0 }
  0xe1   : > { %802 = vmatmul.f32.vlgmr.msra.gmra.mxu0 %v631_v32  ;;  %842 = vmatpush.msra.mxu1 %v2162_v15 }
  0xe2   : > { %934 = vmatpush.msra.mxu3 %v2024_v37  ;;  %879 = vmatpush.msra.mxu2 %v679_v8  ;;  %v639_v1 = vsub.f32 %v1991_v0, %v638_v33  ;;  %v632_v0 = vand.u32 4294901760, %v631_v32 }
  0xe3   : > { %1582 = vset.pattern.permute.xlu1 %v1802_v47  ;;  %1583 = vset.pattern.permute.xlu0 %v1802_v47 }
  0xe4   : > { %936 = vmatpush.msra.mxu3 %v2026_v38  ;;  %883 = vmatpush.msra.mxu2 %v685_v16  ;;  %v633_v37 = vsub.f32 %v631_v32, %v632_v0 }
  0xe5   : > { %748 = vmatmul.f32.gmra.mxu3 %v638_v33  ;;  %846 = vmatmul.f32.vlgmr.msra.gmra.mxu1 %v632_v0  ;;  %v371_v0 = vld [vmem:[#allocation9 + $0x8] sm:$0xff] }
  0xe6   : > { %938 = vmatpush.msra.mxu3 %v2028_v39  ;;  %887 = vmatpush.msra.mxu2 %v691_v25  ;;  %v634_v38 = vand.u32 4294901760, %v633_v37  ;;  %v640_v39 = vand.u32 4294901760, %v639_v1 }
  0xe8   : > { %940 = vmatpush.msra.mxu3 %v2030_v40  ;;  %891 = vmatpush.msra.mxu2 %v697_v34  ;;  %v641_v40 = vsub.f32 %v639_v1, %v640_v39 }
  0xe9   : > { %807 = vmatmul.f32.gmra.mxu0 %v639_v1  ;;  %635 = vmatmul.f32.vlgmr.msrb.gmra.mxu2 %v634_v38 }
  0xea   : > { %942 = vmatpush.msra.mxu3 %v2051_v54  ;;  %895 = vmatpush.msra.mxu2 %v703_v50  ;;  %v642_v45 = vand.u32 4294901760, %v641_v40  ;;  %v580_v54 = vmul.f32 %v2143_v63, %v351_v52 }
  0xec   : > { %944 = vmatpush.msra.mxu3 %v2067_v61  ;;  %899 = vmatpush.msra.mxu2 %v709_v3  ;;  %v581_v55 = vadd.f32 %v580_v54, %v579_v53 }
  0xed   : > { %852 = vmatmul.f32.gmra.mxu1 %v640_v39 }
  0xee   : > { %946 = vmatpush.msra.mxu3 %v2090_v17  ;;  %903 = vmatpush.msra.mxu2 %v715_v7  ;;  %1475 = vpush %v581_v55 }
  0xf0   : > { %948 = vmatpush.msra.mxu3 %v2095_v20  ;;  %907 = vmatpush.msra.mxu2 %v721_v18 }
  0xf1   : > { %643 = vmatmul.f32.gmra.mxu2 %v642_v45 }
  0xf2   : > { %950 = vmatpush.msra.mxu3 %v2098_v23  ;;  %911 = vmatpush.msra.mxu2 %v727_v31 }
  0xf4   : > { %952 = vmatpush.msra.mxu3 %v2100_v24  ;;  %915 = vmatpush.msra.mxu2 %v733_v43 }
  0xf6   : > { %954 = vmatpush.msra.mxu3 %v2115_v28  ;;  %919 = vmatpush.msra.mxu2 %v739_v62 }
  0xf8   : > { %956 = vmatpush.msra.mxu3 %v2136_v51  ;;  %s1472_s11 = spop %1471 }
  0xf9   : > { %921 = vmatmul.f32.vlgmr.msra.gmra.mxu2 %v630_v44  ;;  %v584_v42 = vstv %s1472_s11 }
  0xfa   : > { %958 = vmatpush.msra.mxu3 %v2150_v4  ;;  %v586_v6 = vmul.f32 %v584_v42, %v370_v5 }
  0xfc   : > { %960 = vmatpush.msra.mxu3 %v2162_v15 }
  0xfd   : > { %962 = vmatmul.f32.vlgmr.msra.gmra.mxu3 %v630_v44 }
 0x101   : > { %925 = vmatmul.f32.gmra.mxu2 %v638_v33 }
 0x105   : > { %966 = vmatmul.f32.gmra.mxu3 %v638_v33 }
 0x10a   : > { %s1474_s27 = spop %1473 }
 0x10b   : > { %v972_v60 = vstv %s1474_s27 }
 0x11f   : > { %s1476_s28 = spop %1475 }
 0x120   : > { %v980_v44 = vstv %s1476_s28 }
 0x130   : > { %v411_v48 = vpop.f32.mrf.mxu0 }
 0x138   : > { %v419_v56 = vpop.f32.mrf.mxu0  ;;  %v450_v57 = vpop.f32.mrf.mxu1 }
 0x139   : > { %v480_v58 = vpop.f32.mrf.mxu2  ;;  %v451_v61 = vadd.f32 %v450_v57, %v411_v48  ;;  %v510_v8 = vpop.f32.mrf.mxu3  ;;  %v587_v48 = vmul.f32 %v584_v42, %v371_v0 }
 0x13b   : > { %v481_v16 = vadd.f32 %v480_v58, %v451_v61 }
 0x13d   : > { %v511_v19 = vadd.f32 %v510_v8, %v481_v16 }
 0x140   : > { %v454_v10 = vpop.f32.mrf.mxu1  ;;  %v543_v17 = vpop.f32.mrf.mxu0 }
 0x141   : > { %v455_v20 = vadd.f32 %v454_v10, %v419_v56  ;;  %v485_v23 = vpop.f32.mrf.mxu2  ;;  %v544_v24 = vadd.f32 %v543_v17, %v511_v19  ;;  %v516_v28 = vpop.f32.mrf.mxu3 }
 0x143   : > { %v486_v26 = vadd.f32 %v485_v23, %v455_v20 }
 0x145   : > { %v517_v35 = vadd.f32 %v516_v28, %v486_v26 }
 0x148   : > { %v570_v25 = vpop.f32.mrf.mxu1  ;;  %v547_v34 = vpop.f32.mrf.mxu0 }
 0x149   : > { %v571_v27 = vadd.f32 %v570_v25, %v544_v24  ;;  %v548_v41 = vadd.f32 %v547_v34, %v517_v35  ;;  %v1804_v34 = vmov 2475754826  }
 0x14b   : > { %590 = vperm.xlu1 %1582, %v571_v27   ;;  %v1803_v27 = vmov 683565275  }
 0x150   : > { %v574_v50 = vpop.f32.mrf.mxu1 }
 0x151   : > { %v575_v51 = vadd.f32 %v574_v50, %v548_v41 }
 0x153   : > { %595 = vperm.xlu1 %1582, %v575_v51   ;;  %v1805_v51 = vmov 2131351028  }
 0x15e   : > { %v803_v13 = vpop.f32.mrf.mxu0 }
 0x160   : > { %v745_v63 = vpop.f32.mrf.mxu3 }
 0x162   : > { %v847_v14 = vpop.f32.mrf.mxu1 }
 0x166   : > { %v808_v62 = vpop.f32.mrf.mxu0 }
 0x168   : > { %v749_v4 = vpop.f32.mrf.mxu3 }
 0x16a   : > { %v853_v12 = vpop.f32.mrf.mxu1 }
 0x16c   : > { %v636_v59 = vpop.f32.mrf.mxu2 }
 0x174   : > { %v644_v3 = vpop.f32.mrf.mxu2 }
 0x17c   : > { %v922_v21 = vpop.f32.mrf.mxu2 }
 0x180   : > { %v963_v31 = vpop.f32.mrf.mxu3 }
 0x184   : > { %v926_v32 = vpop.f32.mrf.mxu2 }
 0x188   : > { %v967_v39 = vpop.f32.mrf.mxu3 }
 0x1bd   : > { %v591_v7 = vpop.permute.xlu1 %590 }
 0x1be   : > { %v637_v15 = vadd.f32 %v636_v59, %v591_v7 }
 0x1c0   : > { %v746_v18 = vadd.f32 %v745_v63, %v637_v15 }
 0x1c2   : > { %v804_v29 = vadd.f32 %v803_v13, %v746_v18  ;;  %v1807_v13 = vmov 920167782   ;;  %v1808_v18 = vmov 1326507024  }
 0x1c4   : > { %v848_v30 = vadd.f32 %v847_v14, %v804_v29 }
 0x1c5   : > { %v596_v36 = vpop.permute.xlu1 %595 }
 0x1c6   : > { %v645_v43 = vadd.f32 %v644_v3, %v596_v36  ;;  %v923_v46 = vadd.f32 %v922_v21, %v848_v30  ;;  %v1806_v3 = vmov 2102212464  }
 0x1c8   : > { %v964_v2 = vadd.f32 %v963_v31, %v923_v46  ;;  %v750_v11 = vadd.f32 %v749_v4, %v645_v43 }
 0x1ca   : > { %v974_v22 = vmul.f32 %v972_v60, %v964_v2  ;;  %v809_v9 = vadd.f32 %v808_v62, %v750_v11 }
 0x1cc   : > { %v854_v33 = vadd.f32 %v853_v12, %v809_v9  ;;  %v976_v1 = vadd.f32 %v974_v22, %v586_v6 }
 0x1ce   : > { %v2290_v37 = vadd.f32 %v980_v44, %v976_v1  ;;  %v927_v38 = vadd.f32 %v926_v32, %v854_v33 }
 0x1d0   : > { %v984_v40 = vand.u32 2147483647, %v2290_v37  ;;  %v987_v45 = vand.u32 2139095040, %v2290_v37  ;;  %v968_v49 = vadd.f32 %v967_v39, %v927_v38 }
 0x1d2   : > { %v988_v52 = vshrl.u32 %v987_v45, 23  ;;  %v991_v53 = vand.u32 8388607, %v984_v40  ;;  %v975_v54 = vmul.f32 %v972_v60, %v968_v49 }
 0x1d4   : > { %v1458_v55 = vadd.s32 4294967169, %v988_v52  ;;  %v992_v56 = vor.u32 8388608, %v991_v53  ;;  %v977_v57 = vadd.f32 %v975_v54, %v587_v48 }
 0x1d6   : > { %v994_v58 = vadd.s32 1, %v1458_v55  ;;  %v2296_v61 = vadd.f32 %v980_v44, %v977_v57  ;;  %v2298_v8 = vshll.u32 %v992_v56, 8 }
 0x1d8   : > { %vm995_vm2 = vcmp.gt.s32.totalorder %v994_v58, 0  ;;  %v1139_v16 = vand.u32 2147483647, %v2296_v61  ;;  %v1142_v17 = vand.u32 2139095040, %v2296_v61  ;;  %v1033_v23 = vand.u32 65535, %v2298_v8 }
 0x1d9   : > { %v996_v10 = vsel %vm995_vm2, %v994_v58, 0  ;;  %v1034_v24 = vshrl.u32 %v2298_v8, 16 }
 0x1da   : > { %v998_v19 = vand.u32 31, %v996_v10  ;;  %v1143_v25 = vshrl.u32 %v1142_v17, 23  ;;  %v997_v26 = vshrl.u32 %v996_v10, 5  ;;  %v2308_v41 = vand.u32 8388607, %v1139_v16 }
 0x1dc   : > { %v999_v20 = vsub.s32 32, %v998_v19  ;;  %v1001_v28 = vshll.u32 %v1803_v27, %v998_v19  ;;  %v1004_v35 = vshll.u32 %v1804_v34, %v998_v19  ;;  %v1007_v63 = vshll.u32 %v1805_v51, %v998_v19 }
 0x1dd   : > { %v1010_v7 = vshll.u32 %v1806_v3, %v998_v19  ;;  %v1013_v14 = vshll.u32 %v1807_v13, %v998_v19  ;;  %v1461_v36 = vadd.s32 4294967169, %v1143_v25  ;;  %vm1016_vm3 = vcmp.lt.s32.totalorder %v997_v26, 1 }
 0x1de   : > { %v1002_v50 = vshrl.u32 %v1804_v34, %v999_v20  ;;  %v1005_v59 = vshrl.u32 %v1805_v51, %v999_v20  ;;  %v1008_v4 = vshrl.u32 %v1806_v3, %v999_v20  ;;  %v1011_v15 = vshrl.u32 %v1807_v13, %v999_v20 }
 0x1df   : > { %v1014_v21 = vshrl.u32 %v1808_v18, %v999_v20  ;;  %vm1019_vm4 = vcmp.lt.s32.totalorder %v997_v26, 4  ;;  %v1000_v43 = vshrl.u32 %v1803_v27, %v999_v20  ;;  %vm1018_vm5 = vcmp.lt.s32.totalorder %v997_v26, 3 }
 0x1e0   : > { %v1003_v29 = vor.u32 %v1002_v50, %v1001_v28  ;;  %v1006_v30 = vor.u32 %v1005_v59, %v1004_v35  ;;  %v1009_v31 = vor.u32 %v1008_v4, %v1007_v63  ;;  %v1012_v5 = vor.u32 %v1011_v15, %v1010_v7 }
 0x1e1   : > { %v1015_v42 = vor.u32 %v1014_v21, %v1013_v14  ;;  %v1149_v11 = vadd.s32 1, %v1461_v36  ;;  %vm1017_vm6 = vcmp.lt.s32.totalorder %v997_v26, 2  ;;  %v1147_v45 = vor.u32 8388608, %v2308_v41 }
 0x1e2   : > { %v1021_v46 = vsel %vm1019_vm4, %v1009_v31, 2102212464  ;;  %v1024_v60 = vsel %vm1016_vm3, %v1003_v29, %v1006_v30  ;;  %v1028_v62 = vsel %vm1016_vm3, %v1006_v30, %v1009_v31  ;;  %v1025_v2 = vsel %vm1019_vm4, %v1012_v5, 920167782 }
 0x1e3   : > { %v1029_v6 = vsel %vm1019_vm4, %v1015_v42, 1326507024  ;;  %v1020_v12 = vsel %vm1016_vm3, %v1000_v43, %v1003_v29  ;;  %v1026_v22 = vsel %vm1018_vm5, %v1009_v31, %v1025_v2  ;;  %v1022_v44 = vsel %vm1018_vm5, %v1006_v30, %v1021_v46 }
 0x1e4   : > { %v1030_v9 = vsel %vm1018_vm5, %v1012_v5, %v1029_v6  ;;  %v1027_v32 = vsel %vm1017_vm6, %v1024_v60, %v1026_v22  ;;  %vm1150_vm7 = vcmp.gt.s32.totalorder %v1149_v11, 0  ;;  %v2320_v48 = vsel %vm1017_vm6, %v1020_v12, %v1022_v44 }
 0x1e5   : > { %v1031_v33 = vsel %vm1017_vm6, %v1028_v62, %v1030_v9  ;;  %v1057_v38 = vand.u32 65535, %v1027_v32  ;;  %v1058_v39 = vshrl.u32 %v1027_v32, 16  ;;  %v1151_v53 = vsel %vm1150_vm7, %v1149_v11, 0 }
 0x1e6   : > { %v1035_v1 = vand.u32 65535, %v1031_v33  ;;  %v1036_v0 = vshrl.u32 %v1031_v33, 16  ;;  %v1153_v50 = vand.u32 31, %v1151_v53  ;;  %v2327_v21 = vshrl.u32 %v1151_v53, 5 }
 0x1e7   : > { %v1060_v56 = vmul.u32 %v1058_v39, %v1033_v23  ;;  %v1061_v57 = vmul.u32 %v1057_v38, %v1034_v24  ;;  %v1059_v17 = vmul.u32 %v1057_v38, %v1033_v23  ;;  %v1062_v19 = vmul.u32 %v1058_v39, %v1034_v24 }
 0x1e8   : > { %v1038_v49 = vmul.u32 %v1036_v0, %v1033_v23  ;;  %v1039_v52 = vmul.u32 %v1035_v1, %v1034_v24  ;;  %v1037_v54 = vmul.u32 %v1035_v1, %v1033_v23  ;;  %v1040_v55 = vmul.u32 %v1036_v0, %v1034_v24 }
 0x1e9   : > { %v1063_v26 = vshll.u32 %v1060_v56, 16  ;;  %v1064_v28 = vshrl.u32 %v1060_v56, 16  ;;  %v1065_v41 = vshll.u32 %v1061_v57, 16  ;;  %v1066_v63 = vshrl.u32 %v1061_v57, 16 }
 0x1ea   : > { %v1041_v58 = vshll.u32 %v1038_v49, 16  ;;  %v1042_v10 = vshrl.u32 %v1038_v49, 16  ;;  %v1043_v20 = vshll.u32 %v1039_v52, 16  ;;  %v1044_v25 = vshrl.u32 %v1039_v52, 16 }
 0x1eb   : > { %vm1067_vm9 = vc.u32 %v1059_v17, %v1063_v26  ;;  %v1069_v4 = vadd.s32 %v1063_v26, %v1059_v17  ;;  %v2324_v14 = vsub.s32 32, %v1153_v50  ;;  %v1156_v36 = vshll.u32 %v1803_v27, %v1153_v50 }
 0x1ec   : > { %vm1045_vm8 = vc.u32 %v1037_v54, %v1041_v58  ;;  %v1047_v35 = vadd.s32 %v1041_v58, %v1037_v54  ;;  %v1068_v15 = vsel %vm1067_vm9, 1, %v1802_v47  ;;  %v1159_v43 = vshll.u32 %v1804_v34, %v1153_v50 }
 0x1ed   : > { %v1046_v59 = vsel %vm1045_vm8, 1, %v1802_v47  ;;  %v1070_v24 = vadd.s32 %v1068_v15, %v1062_v19  ;;  %vm1071_vm11 = vc.u32 %v1069_v4, %v1065_v41  ;;  %v2330_v31 = vadd.s32 %v1069_v4, %v1065_v41 }
 0x1ee   : > { %v1048_v7 = vadd.s32 %v1046_v59, %v1040_v55  ;;  %vm1049_vm10 = vc.u32 %v1047_v35, %v1043_v20  ;;  %v1072_v30 = vsel %vm1071_vm11, 1, %v1802_v47  ;;  %v1157_v42 = vshrl.u32 %v1804_v34, %v2324_v14 }
 0x1ef   : > { %v1050_v23 = vsel %vm1049_vm10, 1, %v1802_v47  ;;  %v1074_v5 = vadd.s32 %v1072_v30, %v1070_v24  ;;  %v1160_v46 = vshrl.u32 %v1805_v51, %v2324_v14  ;;  %v1162_v62 = vshll.u32 %v1805_v51, %v1153_v50 }
 0x1f0   : > { %v1052_v29 = vadd.s32 %v1050_v23, %v1048_v7  ;;  %v1163_v2 = vshrl.u32 %v1806_v3, %v2324_v14  ;;  %v1165_v6 = vshll.u32 %v1806_v3, %v1153_v50  ;;  %v2342_v12 = vor.u32 %v1157_v42, %v1156_v36 }
 0x1f1   : > { %v1075_v11 = vadd.s32 %v1074_v5, %v1064_v28  ;;  %v2344_v22 = vor.u32 %v1160_v46, %v1159_v43  ;;  %v1166_v9 = vshrl.u32 %v1807_v13, %v2324_v14  ;;  %v1168_v32 = vshll.u32 %v1807_v13, %v1153_v50 }
 0x1f2   : > { %v1053_v60 = vadd.s32 %v1052_v29, %v1042_v10  ;;  %v1164_v44 = vor.u32 %v1163_v2, %v1162_v62  ;;  %v1169_v51 = vshrl.u32 %v1808_v18, %v2324_v14  ;;  %vm1171_vm13 = vcmp.lt.s32.totalorder %v2327_v21, 1 }
 0x1f3   : > { %v1076_v33 = vadd.s32 %v1075_v11, %v1066_v63  ;;  %v1167_v1 = vor.u32 %v1166_v9, %v1165_v6  ;;  %v2356_v0 = vshll.u32 %v1147_v45, 8  ;;  %v1077_v38 = vmul.u32 %v2298_v8, %v2320_v48 }
 0x1f4   : > { %v2348_v34 = vadd.s32 %v1053_v60, %v1044_v25  ;;  %v1170_v3 = vor.u32 %v1169_v51, %v1168_v32  ;;  %vm1174_vm14 = vcmp.lt.s32.totalorder %v2327_v21, 4  ;;  %v1179_v13 = vsel %vm1171_vm13, %v2342_v12, %v2344_v22 }
 0x1f5   : > { %v1080_v39 = vadd.s32 1, %v1076_v33  ;;  %vm1173_vm15 = vcmp.lt.s32.totalorder %v2327_v21, 3  ;;  %v1180_v18 = vsel %vm1174_vm14, %v1167_v1, 920167782  ;;  %v1183_v45 = vsel %vm1171_vm13, %v2344_v22, %v1164_v44 }
 0x1f6   : > { %vm1079_vm12 = vc.u32 %v2348_v34, %v2330_v31  ;;  %v1184_v8 = vsel %vm1174_vm14, %v1170_v3, 1326507024  ;;  %vm1172_vm0 = vcmp.lt.s32.totalorder %v2327_v21, 2  ;;  %v1181_v49 = vsel %vm1173_vm15, %v1164_v44, %v1180_v18 }
 0x1f7   : > { %v1081_v48 = vsel %vm1079_vm12, %v1080_v39, %v1076_v33  ;;  %v1185_v52 = vsel %vm1173_vm15, %v1167_v1, %v1184_v8  ;;  %v1182_v54 = vsel %vm1172_vm0, %v1179_v13, %v1181_v49  ;;  %v1188_v56 = vand.u32 65535, %v2356_v0 }
 0x1f8   : > { %v1082_v53 = vadd.s32 %v1081_v48, %v1077_v38  ;;  %v1186_v55 = vsel %vm1172_vm0, %v1183_v45, %v1185_v52  ;;  %v1189_v57 = vshrl.u32 %v2356_v0, 16  ;;  %v1213_v17 = vshrl.u32 %v1182_v54, 16 }
 0x1f9   : > { %v1190_v58 = vand.u32 65535, %v1186_v55  ;;  %v1191_v10 = vshrl.u32 %v1186_v55, 16  ;;  %v1212_v20 = vand.u32 65535, %v1182_v54  ;;  %v1176_v51 = vsel %vm1174_vm14, %v1164_v44, 2102212464 }
 0x1fa   : > { %v1083_v19 = vadd.s32 536870912, %v1082_v53  ;;  %v1215_v35 = vmul.u32 %v1213_v17, %v1188_v56  ;;  %v1217_v46 = vmul.u32 %v1213_v17, %v1189_v57  ;;  %v1155_v1 = vshrl.u32 %v1803_v27, %v2324_v14 }
 0x1fb   : > { %v1193_v25 = vmul.u32 %v1191_v10, %v1188_v56  ;;  %v1194_v26 = vmul.u32 %v1190_v58, %v1189_v57  ;;  %v1192_v41 = vmul.u32 %v1190_v58, %v1188_v56  ;;  %v1195_v63 = vmul.u32 %v1191_v10, %v1189_v57 }
 0x1fc   : > { %v2384_v28 = vshrl.u32 %v1083_v19, 30  ;;  %v1214_v4 = vmul.u32 %v1212_v20, %v1188_v56  ;;  %v1218_v7 = vshll.u32 %v1215_v35, 16  ;;  %v1216_v24 = vmul.u32 %v1212_v20, %v1189_v57 }
 0x1fd   : > { %v1196_v50 = vshll.u32 %v1193_v25, 16  ;;  %v1198_v15 = vshll.u32 %v1194_v26, 16  ;;  %v1197_v36 = vshrl.u32 %v1193_v25, 16  ;;  %v1199_v3 = vshrl.u32 %v1194_v26, 16 }
 0x1fe   : > { %v1085_v59 = vshll.u32 %v2384_v28, 30  ;;  %vm1222_vm3 = vc.u32 %v1214_v4, %v1218_v7  ;;  %v1220_v62 = vshll.u32 %v1216_v24, 16  ;;  %v1224_v6 = vadd.s32 %v1218_v7, %v1214_v4 }
 0x1ff   : > { %vm1200_vm1 = vc.u32 %v1192_v41, %v1196_v50  ;;  %v1202_v23 = vadd.s32 %v1196_v50, %v1192_v41  ;;  %v1223_v2 = vsel %vm1222_vm3, 1, %v1802_v47  ;;  %v1219_v13 = vshrl.u32 %v1215_v35, 16 }
 0x200   : > { %v1086_v29 = vsub.s32 %v1082_v53, %v1085_v59  ;;  %v1201_v30 = vsel %vm1200_vm1, 1, %v1802_v47  ;;  %v1225_v9 = vadd.s32 %v1223_v2, %v1217_v46  ;;  %vm1226_vm5 = vc.u32 %v1224_v6, %v1220_v62 }
 0x201   : > { %v1203_v5 = vadd.s32 %v1201_v30, %v1195_v63  ;;  %vm1204_vm2 = vc.u32 %v1202_v23, %v1198_v15  ;;  %v1227_v38 = vsel %vm1226_vm5, 1, %v1802_v47  ;;  %v1175_v45 = vsel %vm1171_vm13, %v1155_v1, %v2342_v12 }
 0x202   : > { %vm1087_vm4 = vcmp.lt.s32.totalorder %v1086_v29, 0  ;;  %v1088_v42 = vsub.s32 0, %v1086_v29  ;;  %v1205_v43 = vsel %vm1204_vm2, 1, %v1802_v47  ;;  %v1229_v18 = vadd.s32 %v1227_v38, %v1225_v9 }
 0x203   : > { %v1207_v60 = vadd.s32 %v1205_v43, %v1203_v5  ;;  %v1177_v8 = vsel %vm1173_vm15, %v2344_v22, %v1176_v51  ;;  %v1221_v48 = vshrl.u32 %v1216_v24, 16  ;;  %v1078_v27 = vadd.s32 %v2330_v31, %v2348_v34 }
 0x204   : > { %v1089_v11 = vsel %vm1087_vm4, %v1088_v42, %v1086_v29  ;;  %v1230_v49 = vadd.s32 %v1229_v18, %v1219_v13  ;;  %v1228_v47 = vadd.s32 %v1224_v6, %v1220_v62  ;;  %v1178_v54 = vsel %vm1172_vm0, %v1175_v45, %v1177_v8 }
 0x205   : > { %v1090_v32 = vclz %v1089_v11  ;;  %v1208_v33 = vadd.s32 %v1207_v60, %v1197_v36  ;;  %v1232_v58 = vmul.u32 %v2356_v0, %v1178_v54  ;;  %vm986_vm8 = vcmp.lt.s32.totalorder %v2290_v37, 0 }
 0x206   : > { %v1231_v55 = vadd.s32 %v1230_v49, %v1221_v48  ;;  %vm2412_vm9 = vcmp.le.f32.partialorder %v984_v40, 0.7853982  ;;  %v1108_v4 = vsub.s32 4, %v2384_v28  ;;  %vm1127_vm15 = vweird.f32 %v2290_v37 }
 0x207   : > { %v1459_v39 = vadd.s32 4294967294, %v1090_v32  ;;  %v1209_v44 = vadd.s32 %v1208_v33, %v1199_v3  ;;  %vm1141_vm0 = vcmp.lt.s32.totalorder %v2296_v61, 0  ;;  %vm1140_vm1 = vcmp.le.f32.partialorder %v1139_v16, 0.7853982 }
 0x208   : > { %v1235_v22 = vadd.s32 1, %v1231_v55  ;;  %v1109_v5 = vsel %vm986_vm8, %v1108_v4, %v2384_v28  ;;  %vm1282_vm5 = vweird.f32 %v2296_v61 }
 0x209   : > { %vm1460_vm6 = vcmp.lt.s32.totalorder %v1459_v39, 0  ;;  %vm1234_vm7 = vc.u32 %v1209_v44, %v1228_v47  ;;  %v1111_v46 = vsel %vm2412_vm9, 0, %v1109_v5  ;;  %v1233_v9 = vadd.s32 %v1228_v47, %v1209_v44 }
 0x20a   : > { %v1093_v14 = vsel %vm1460_vm6, 0, %v1459_v39  ;;  %v1236_v19 = vsel %vm1234_vm7, %v1235_v22, %v1231_v55  ;;  %v1128_v51 = vadd.s32 3, %v1111_v46 }
 0x20b   : > { %v1094_v52 = vsub.s32 32, %v1093_v14  ;;  %v1098_v53 = vsub.s32 4294967266, %v1093_v14  ;;  %v1095_v12 = vshll.u32 %v1086_v29, %v1093_v14  ;;  %v1237_v20 = vadd.s32 %v1236_v19, %v1232_v58 }
 0x20c   : > { %v1129_v45 = vand.u32 3, %v1128_v51 }
 0x20d   : > { %v1096_v56 = vshrl.u32 %v1078_v27, %v1094_v52  ;;  %v1099_v57 = vadd.s32 127, %v1098_v53  ;;  %v1238_v34 = vadd.s32 536870912, %v1237_v20 }
 0x20e   : > { %vm1131_vm12 = vcmp.eq.s32.totalorder %v1129_v45, 0  ;;  %vm1134_vm13 = vcmp.eq.s32.totalorder %v1129_v45, 2  ;;  %vm1130_vm14 = vcmp.lt.s32.totalorder %v1129_v45, 2 }
 0x20f   : > { %v1097_v10 = vor.u32 %v1096_v56, %v1095_v12  ;;  %v1100_v17 = vshll.u32 %v1099_v57, 23  ;;  %v2406_v35 = vshrl.u32 %v1238_v34, 30 }
 0x211   : > { %v1101_v31 = vor.u32 4788187, %v1100_v17  ;;  %v1104_v26 = vcvt.s32.f32 %v1097_v10  ;;  %v1240_v41 = vshll.u32 %v2406_v35, 30  ;;  %v1263_v58 = vsub.s32 4, %v2406_v35 }
 0x213   : > { %v1102_v25 = vand.u32 2147483647, %v1101_v31  ;;  %v1241_v59 = vsub.s32 %v1237_v20, %v1240_v41  ;;  %v1264_v20 = vsel %vm1141_vm0, %v1263_v58, %v2406_v35 }
 0x215   : > { %v1105_v21 = vmul.f32 %v1104_v26, %v1102_v25  ;;  %vm1242_vm10 = vcmp.lt.s32.totalorder %v1241_v59, 0  ;;  %v1243_v15 = vsub.s32 0, %v1241_v59  ;;  %v1266_v25 = vsel %vm1140_vm1, 0, %v1264_v20 }
 0x216   : > { %v1283_v16 = vadd.s32 3, %v1266_v25 }
 0x217   : > { %v1106_v50 = vxor.u32 2147483648, %v1105_v21  ;;  %v1244_v24 = vsel %vm1242_vm10, %v1243_v15, %v1241_v59 }
 0x218   : > { %v1245_v36 = vclz %v1244_v24 }
 0x219   : > { %v1107_v63 = vsel %vm986_vm8, %v1106_v50, %v1105_v21 }
 0x21a   : > { %v1110_v7 = vsel %vm2412_vm9, %v2290_v37, %v1107_v63  ;;  %v1462_v43 = vadd.s32 4294967294, %v1245_v36 }
 0x21b   : > { %v1112_v23 = vmul.f32 %v1110_v7, %v1110_v7 }
 0x21c   : > { %vm1463_vm11 = vcmp.lt.s32.totalorder %v1462_v43, 0 }
 0x21d   : > { %v1113_v29 = vmul.f32 -0.001358992, %v1112_v23  ;;  %v1120_v30 = vmul.f32 -0.00019511016, %v1112_v23  ;;  %v1248_v2 = vsel %vm1463_vm11, 0, %v1462_v43 }
 0x21e   : > { %v1249_v32 = vsub.s32 32, %v1248_v2  ;;  %v1253_v33 = vsub.s32 4294967266, %v1248_v2  ;;  %v1250_v28 = vshll.u32 %v1241_v59, %v1248_v2 }
 0x21f   : > { %v1114_v40 = vadd.f32 0.041655596, %v1113_v29  ;;  %v1121_v42 = vadd.f32 0.008332121, %v1120_v30 }
 0x220   : > { %v1251_v38 = vshrl.u32 %v1233_v9, %v1249_v32  ;;  %v1254_v39 = vadd.s32 127, %v1253_v33 }
 0x221   : > { %v1115_v60 = vmul.f32 %v1114_v40, %v1112_v23  ;;  %v1122_v62 = vmul.f32 %v1121_v42, %v1112_v23 }
 0x222   : > { %v1252_v8 = vor.u32 %v1251_v38, %v1250_v28  ;;  %v1255_v48 = vshll.u32 %v1254_v39, 23 }
 0x223   : > { %v1116_v6 = vadd.f32 -0.4999988, %v1115_v60  ;;  %v1123_v11 = vadd.f32 -0.16666654, %v1122_v62 }
 0x224   : > { %v1256_v14 = vor.u32 4788187, %v1255_v48  ;;  %v1259_v47 = vcvt.s32.f32 %v1252_v8 }
 0x225   : > { %v1117_v1 = vmul.f32 %v1116_v6, %v1112_v23  ;;  %v1124_v3 = vmul.f32 %v1123_v11, %v1112_v23 }
 0x226   : > { %v1257_v44 = vand.u32 2147483647, %v1256_v14 }
 0x227   : > { %v1118_v13 = vadd.f32 1.0, %v1117_v1  ;;  %v1125_v18 = vadd.f32 1.0, %v1124_v3 }
 0x228   : > { %v1260_v12 = vmul.f32 %v1259_v47, %v1257_v44 }
 0x229   : > { %v1126_v49 = vmul.f32 %v1125_v18, %v1110_v7  ;;  %v1135_v27 = vxor.u32 2147483648, %v1118_v13  ;;  %v1284_v7 = vand.u32 3, %v1283_v16 }
 0x22a   : > { %v1261_v57 = vxor.u32 2147483648, %v1260_v12 }
 0x22b   : > { %v1132_v52 = vxor.u32 2147483648, %v1126_v49  ;;  %v1136_v54 = vsel %vm1134_vm13, %v1135_v27, %v1126_v49  ;;  %vm1286_vm2 = vcmp.eq.s32.totalorder %v1284_v7, 0  ;;  %vm1289_vm3 = vcmp.eq.s32.totalorder %v1284_v7, 2 }
 0x22c   : > { %v1262_v22 = vsel %vm1141_vm0, %v1261_v57, %v1260_v12  ;;  %vm1285_vm4 = vcmp.lt.s32.totalorder %v1284_v7, 2 }
 0x22d   : > { %v1133_v53 = vsel %vm1131_vm12, %v1118_v13, %v1132_v52  ;;  %v1265_v37 = vsel %vm1140_vm1, %v2296_v61, %v1262_v22 }
 0x22e   : > { %v1137_v55 = vsel %vm1130_vm14, %v1133_v53, %v1136_v54  ;;  %v1267_v10 = vmul.f32 %v1265_v37, %v1265_v37 }
 0x22f   : > { %v1138_v56 = vsel %vm1127_vm15, nan, %v1137_v55 }
 0x230   : > { %1294 = vst [vmem:[%s2426_s9] sm:$0xff] %v1138_v56  ;;  %v1275_v17 = vmul.f32 -0.00019511016, %v1267_v10  ;;  %v1268_v19 = vmul.f32 -0.001358992, %v1267_v10 }
 0x232   : > { %v1276_v31 = vadd.f32 0.008332121, %v1275_v17  ;;  %v1269_v34 = vadd.f32 0.041655596, %v1268_v19 }
 0x234   : > { %v1277_v26 = vmul.f32 %v1276_v31, %v1267_v10  ;;  %v1270_v21 = vmul.f32 %v1269_v34, %v1267_v10 }
 0x236   : > { %v1278_v41 = vadd.f32 -0.16666654, %v1277_v26  ;;  %v1271_v50 = vadd.f32 -0.4999988, %v1270_v21 }
 0x238   : > { %v1279_v59 = vmul.f32 %v1278_v41, %v1267_v10  ;;  %v1272_v0 = vmul.f32 %v1271_v50, %v1267_v10 }
 0x23a   : > { %v1280_v63 = vadd.f32 1.0, %v1279_v59  ;;  %v1273_v4 = vadd.f32 1.0, %v1272_v0 }
 0x23c   : > { %v1281_v35 = vmul.f32 %v1280_v63, %v1265_v37  ;;  %v1290_v15 = vxor.u32 2147483648, %v1273_v4 }
 0x23e   : > { %v1287_v23 = vxor.u32 2147483648, %v1281_v35  ;;  %v1291_v29 = vsel %vm1289_vm3, %v1290_v15, %v1281_v35 }
 0x240   : > { %v1288_v24 = vsel %vm1286_vm2, %v1273_v4, %v1287_v23 }
 0x241   : > { %v1292_v30 = vsel %vm1285_vm4, %v1288_v24, %v1291_v29 }
 0x242   : > { %v1293_v36 = vsel %vm1282_vm5, nan, %v1292_v30 }
 0x243   : > { %1295 = vst [vmem:[%s2426_s9 + $0x8] sm:$0xff] %v1293_v36 }
 0x244   : > { %1731 = shalt.err (!%p1728_p0)
}
 0x245   : > { %s1809_s14 = smov 128   ;;  %s1810_s11 = smov 8  }
 0x246   : > { %1491 = dma.vmem_to_hbm [thread:$0]  (%p1950_p5), %s1322_s19, 256, %s1324_s20, %s1307_s24, %s1809_s14, %s1809_s14, %s1810_s11  }
 0x247 PF: > { %s1338_s27 = sand.u32 1, %s1774_s21   ;;  %p1508_p3 = pnand %p1448_p11, %p1895_p6 }
 0x248   : > { %s1339_s28 = scalar_lea.sflag [#allocation5], %s1338_s27 }
 0x249   : > { %p1509_p7 = pneg %p1508_p3 }
 0x24b   : > { %1769 = dma.done.wait (%p1509_p7), %s1339_s28, 256  }
 0x24c   : > { %1771 = vsyncadd (%p1509_p7), %s1339_s28, 4294967040  ;;  %s24_s26 = sadd.s32 1, %s1794_s26   ;;  %s2505_s15 = sld [smem:[#allocation16_spill]] }
 0x24d   : > { %p21_p9 = scmp.ge.s32.totalorder %s24_s26, 4   ;;  %s2506_s21 = smov %s1778_s22 }
 0x24e   : > { %s2507_s22 = smov %s1782_s23  ;;  %s2508_s23 = smov %s1959_s10 }
 0x24f   : > { %s2509_s24 = smov %s1790_s25  ;;  %23 = sbr.rel (!%p21_p9) target bundleno = 12 (0xc), region = 107 }
 0x252   : > { %s2510_s25 = smov %s2505_s15 }
 0x254   :  { %1345 = vsyncpa [#allocation4], 1 }
 0x255   :  { %1347 = vsyncpa [#allocation4 + $0x1], 1 }
 0x256   :  { %1348 = vsyncpa [#allocation7], 1 }
 0x257   :  { %1349 = vsyncpa [#allocation10], 1 }
 0x258   :  { %1350 = vsyncpa [#allocation5], 1 }
 0x259   :  { %1352 = vsyncpa [#allocation5 + $0x1], 1 }

</bundles_post_ra>
